<compile_context>
chip_gen: v5e
topology: v5e:2x2
jax: 0.10.0
libtpu: 0.0.40
codegen_flags: <defaults>
</compile_context>

<pallas_src>
import jax
import jax.numpy as jnp
from jax.experimental import pallas as pl
from jax.experimental.pallas import tpu as pltpu


def _spatial_softmax_kernel(inv_t_ref, x_ref, coords_ref, out_ref):
    # inv_t_ref  : SMEM (1,)      -- 1 / softmax temperature
    # x_ref      : VMEM (tm, L)   -- flattened feature maps (rows = n*c tile)
    # coords_ref : VMEM (L, 3)    -- stacked [x_map | y_map | 1]
    # out_ref    : VMEM (tm, 2)   -- [expected_x, expected_y] per row
    inv_t = inv_t_ref[0]
    x = x_ref[...].astype(jnp.float32)

    # Numerically-stable, temperature-scaled softmax weights (unnormalized).
    # max(x / t) == max(x) / t for t > 0, so fold 1/t into the exp argument.
    m = jnp.max(x, axis=-1, keepdims=True)
    e = jnp.exp((x - m) * inv_t)

    # One MXU pass produces [sum(e*x_map), sum(e*y_map), sum(e)] per row; the
    # ones column rides along for free (N is padded to 128 lanes anyway), so
    # no per-row cross-lane sum is needed on the XLU.
    acc = jnp.dot(e, coords_ref[...], preferred_element_type=jnp.float32)
    denom = acc[:, 2:3]                                  # (tm, 1) softmax sum
    out_ref[...] = (acc[:, :2] * pl.reciprocal(denom)).astype(out_ref.dtype)


def make_coordinate_maps(num_rows: int, num_cols: int):
    """Replicates torch.meshgrid(linspace(-1,1,num_cols), linspace(-1,1,num_rows),
    indexing='ij') followed by reshape(-1) — same (quirky) ordering as the module."""
    lin_cols = jnp.linspace(-1.0, 1.0, num_cols)
    lin_rows = jnp.linspace(-1.0, 1.0, num_rows)
    grid_x, grid_y = jnp.meshgrid(lin_cols, lin_rows, indexing="ij")
    x_map = grid_x.reshape(-1).astype(jnp.float32)
    y_map = grid_y.reshape(-1).astype(jnp.float32)
    return x_map, y_map


def _vmem_capacity_bytes() -> int:
    """Physical VMEM per core; conservative (v7x per-TC) fallback if unknown."""
    try:
        return int(pltpu.get_tpu_info().vmem_capacity_bytes)
    except Exception:
        return 64 << 20


def _sublane_multiple(itemsize: int) -> int:
    # Row granularity of the native layout: 8 for f32, 16 for bf16, 32 for 1B.
    return max(8, 32 // max(itemsize, 1))


def _choose_tm(R: int, L: int, itemsize: int, budget_bytes: int,
               sub: int, multi_core: bool) -> int:
    """Pick the row tile from a total-VMEM byte budget (no artificial row cap).

    Per-row VMEM cost: double-buffered input block (2*L*itemsize) plus the f32
    intermediates the kernel materializes (~3*L*4: cast, exp arg, exp)."""
    if R <= sub:
        return max(R, 1)                      # full-dim block, single grid step
    per_row = 2 * L * itemsize + 3 * L * 4 + 64
    tm = max(sub, ((budget_bytes // per_row) // sub) * sub)
    tm = min(tm, (R // sub) * sub)            # never exceed R (ragged tail is ok)
    if multi_core and R >= 2 * sub and -(-R // tm) < 2:
        # v7x only: 2 TensorCores share "parallel" grid steps, so make >= 2.
        tm = max(sub, ((R // 2) // sub) * sub)
    return tm


def spatial_softmax(x, x_map, y_map, temperature):
    """x: (n, c, h, w). Returns (n, c*2) float32. Accepts f32 or bf16 input."""
    n, c, h, w = x.shape
    L = h * w
    R = n * c
    assert x_map.shape == (L,) and y_map.shape == (L,)
    itemsize = jnp.dtype(x.dtype).itemsize
    sub = _sublane_multiple(itemsize)

    # Generation-aware sizing: v7x has 64 MiB VMEM per TensorCore (and 2 TCs),
    # v5e/v6e have 128 MiB and a single TC.
    phys_vmem = _vmem_capacity_bytes()
    small_vmem = phys_vmem <= (64 << 20)          # v7x-class
    vmem_cap = (48 << 20) if small_vmem else (96 << 20)
    budget = (36 << 20) if small_vmem else (80 << 20)

    tm = _choose_tm(R, L, itemsize, budget, sub, multi_core=small_vmem)
    grid_steps = (R + tm - 1) // tm               # ragged last block allowed

    # No host-side padding: avoids a full extra HBM round-trip of the input.
    x_flat = x.reshape(R, L)
    coords = jnp.stack(
        [x_map.astype(jnp.float32), y_map.astype(jnp.float32),
         jnp.ones((L,), jnp.float32)], axis=-1)   # (L, 3) = [x | y | 1]
    inv_t = (1.0 / jnp.asarray(temperature, jnp.float32)).reshape(1)

    # VMEM accounting: double-buffered input block + f32 intermediates
    # (x cast, exp) + small out/coords blocks + headroom; capped per chip.
    block_bytes = tm * L * itemsize
    vmem_bytes = (2 * block_bytes + 3 * tm * L * 4
                  + 2 * (tm * 2 * 4) + 2 * (L * 3 * 4) + (4 << 20))
    vmem_bytes = int(min(max(vmem_bytes, 16 << 20), vmem_cap))

    out = pl.pallas_call(
        _spatial_softmax_kernel,
        out_shape=jax.ShapeDtypeStruct((R, 2), jnp.float32),
        grid_spec=pltpu.PrefetchScalarGridSpec(
            num_scalar_prefetch=0,
            grid=(grid_steps,),
            in_specs=[
                pl.BlockSpec(memory_space=pltpu.SMEM),     # 1/temperature
                pl.BlockSpec((tm, L), lambda i: (i, 0)),   # feature-row tile
                pl.BlockSpec((L, 3), lambda i: (0, 0)),    # [x | y | 1] (shared)
            ],
            out_specs=pl.BlockSpec((tm, 2), lambda i: (i, 0)),
        ),
        compiler_params=pltpu.CompilerParams(
            dimension_semantics=("parallel",),
            vmem_limit_bytes=vmem_bytes,
        ),
    )(inv_t, x_flat, coords)

    # matches: expected_xy.view(-1, c * 2)
    return out.reshape(n, c * 2)


def spatial_softmax_ref(x, x_map, y_map, temperature):
    """Pure-JAX reference mirroring the PyTorch forward."""
    n, c, h, w = x.shape
    xf = x.reshape(-1, h * w).astype(jnp.float32) / temperature
    p = jax.nn.softmax(xf, axis=1)
    ex = jnp.sum(x_map * p, axis=1, keepdims=True)
    ey = jnp.sum(y_map * p, axis=1, keepdims=True)
    return jnp.concatenate([ex, ey], axis=1).reshape(n, c * 2)


if __name__ == "__main__":
    key = jax.random.PRNGKey(0)
    k1, k2, k3 = jax.random.split(key, 3)

    # Small shapes consistent with the module's forward: NCHW feature map,
    # module constructed so num_rows * num_cols == h * w.
    n, c, h, w = 2, 4, 16, 16
    x_map, y_map = make_coordinate_maps(h, w)

    # Test 1: primary shape, f32, fixed temperature = 1 (ones(1) * temperature).
    x = jax.random.normal(k1, (n, c, h, w), dtype=jnp.float32)
    coords = jax.block_until_ready(spatial_softmax(x, x_map, y_map, 1.0))
    ref = spatial_softmax_ref(x, x_map, y_map, 1.0)
    assert coords.shape == (n, c * 2)
    assert jnp.allclose(coords, ref, atol=1e-3, rtol=1e-3)

    # Test 2: bf16 input, more channels (multi-step grid; ragged last block on
    # chips where the tile gets clipped/split).
    n2, c2 = 2, 36
    x2 = jax.random.normal(k2, (n2, c2, h, w), dtype=jnp.float32).astype(jnp.bfloat16)
    coords2 = jax.block_until_ready(spatial_softmax(x2, x_map, y_map, 1.0))
    ref2 = spatial_softmax_ref(x2, x_map, y_map, 1.0)
    assert coords2.shape == (n2, c2 * 2)
    assert jnp.allclose(coords2, ref2, atol=2e-3, rtol=2e-3)

    # Test 3: rows not a multiple of 8 and temperature != 1 — exercises the
    # unpadded ragged last tile (masked writes) and the folded 1/t scaling.
    n3, c3 = 3, 3
    x3 = jax.random.normal(k3, (n3, c3, h, w), dtype=jnp.float32)
    coords3 = jax.block_until_ready(spatial_softmax(x3, x_map, y_map, 0.5))
    ref3 = spatial_softmax_ref(x3, x_map, y_map, 0.5)
    assert coords3.shape == (n3, c3 * 2)
    assert jnp.allclose(coords3, ref3, atol=1e-3, rtol=1e-3)

    print("KERNEL_OK")
</pallas_src>

<mosaic_0001>
module attributes {stable_mosaic.version = 11 : i64} {
  func.func @_spatial_softmax_kernel(%arg0: i32, %arg1: memref<1xf32, #tpu.memory_space<smem>>, %arg2: memref<8x256xf32, #tpu.memory_space<vmem>>, %arg3: memref<256x3xf32, #tpu.memory_space<vmem>>, %arg4: memref<8x2xf32, #tpu.memory_space<vmem>>) attributes {dimension_semantics = [#tpu.dimension_semantics<parallel>], iteration_bounds = array<i64: 1>, scalar_prefetch = 0 : i64, scratch_operands = 0 : i64, tpu.core_type = #tpu.core_type<tc>, window_params = [{transform_indices = @transform_0, window_bounds = array<i64: 1>}, {transform_indices = @transform_1, window_bounds = array<i64: 8, 256>}, {pipeline_mode = #tpu.pipeline_mode<synchronous>, transform_indices = @transform_2, window_bounds = array<i64: 256, 3>}, {transform_indices = @transform_3, window_bounds = array<i64: 8, 2>}]} {
    %c0 = arith.constant 0 : index
    %0 = memref.load %arg1[%c0] : memref<1xf32, #tpu.memory_space<smem>>
    %c0_0 = arith.constant 0 : index
    %c0_1 = arith.constant 0 : index
    %1 = vector.load %arg2[%c0_0, %c0_1] : memref<8x256xf32, #tpu.memory_space<vmem>>, vector<8x256xf32>
    %cst = arith.constant dense<0xFF800000> : vector<8xf32>
    %2 = vector.multi_reduction <maximumf>, %1, %cst [1] : vector<8x256xf32> to vector<8xf32>
    %3 = vector.shape_cast %2 : vector<8xf32> to vector<8x1xf32>
    %4 = vector.broadcast %3 : vector<8x1xf32> to vector<8x256xf32>
    %5 = arith.subf %1, %4 : vector<8x256xf32>
    %6 = vector.broadcast %0 : f32 to vector<8x256xf32>
    %7 = arith.mulf %5, %6 : vector<8x256xf32>
    %8 = math.exp %7 : vector<8x256xf32>
    %c0_2 = arith.constant 0 : index
    %c0_3 = arith.constant 0 : index
    %9 = vector.load %arg3[%c0_2, %c0_3] : memref<256x3xf32, #tpu.memory_space<vmem>>, vector<256x3xf32>
    %cst_4 = arith.constant dense<0.000000e+00> : vector<8x3xf32>
    %10 = tpu.matmul %8, %9, %cst_4 {dimension_numbers = #tpu.dot_dimension_numbers<[1], [0], [0], [1], [0, 0, 1, 1], [], []>} : vector<8x256xf32>, vector<256x3xf32>, vector<8x3xf32> -> vector<8x3xf32>
    %11 = vector.extract_strided_slice %10 {offsets = [0, 2], sizes = [8, 1], strides = [1, 1]} : vector<8x3xf32> to vector<8x1xf32>
    %12 = vector.extract_strided_slice %10 {offsets = [0, 0], sizes = [8, 2], strides = [1, 1]} : vector<8x3xf32> to vector<8x2xf32>
    %13 = tpu.reciprocal %11 : vector<8x1xf32> -> vector<8x1xf32>
    %14 = vector.broadcast %13 : vector<8x1xf32> to vector<8x2xf32>
    %15 = arith.mulf %12, %14 : vector<8x2xf32>
    %c0_5 = arith.constant 0 : index
    %c0_6 = arith.constant 0 : index
    %16 = vector.load %arg4[%c0_5, %c0_6] : memref<8x2xf32, #tpu.memory_space<vmem>>, vector<8x2xf32>
    tpu.vector_store %arg4[%c0_5, %c0_6], %15 {strides = array<i32>} : memref<8x2xf32, #tpu.memory_space<vmem>>, vector<8x2xf32>,
    return
  }
  func.func @transform_0(%arg0: i32) -> i32 {
    %c0_i32 = arith.constant 0 : i32
    %c0_i32_0 = arith.constant 0 : i32
    return %c0_i32 : i32
  }
  func.func @transform_1(%arg0: i32) -> (i32, i32) {
    %c0_i32 = arith.constant 0 : i32
    %c0_i32_0 = arith.constant 0 : i32
    return %arg0, %c0_i32 : i32, i32
  }
  func.func @transform_2(%arg0: i32) -> (i32, i32) {
    %c0_i32 = arith.constant 0 : i32
    %c0_i32_0 = arith.constant 0 : i32
    %c0_i32_1 = arith.constant 0 : i32
    return %c0_i32, %c0_i32_0 : i32, i32
  }
  func.func @transform_3(%arg0: i32) -> (i32, i32) {
    %c0_i32 = arith.constant 0 : i32
    %c0_i32_0 = arith.constant 0 : i32
    return %arg0, %c0_i32 : i32, i32
  }
}

</mosaic_0001>

<bundles_post_ra>
// kernel: tpu_custom_call.1
= control target key start
LH: loop header
LB: loop body
LE: loop exit
PB: predicated region body
PF: predicated region fallthrough
CT: control target
= control target key end

     0   :  { %v136_v45 = vmov 2   ;;  %vm122_vm4 = vcmask 15360   ;;  %s273_s1 = inlined_call_operand.vmem [shape: f32[8,256], index: 1, kind: input, shape index: {}]   ;;  %s274_s2 = inlined_call_operand.vmem [shape: f32[256,3], index: 2, kind: input, shape index: {}]   ;;  %s275_s0 = inlined_call_operand.<no memory space> [shape: f32[1], index: 0, kind: input, shape index: {}]   ;;  %s276_s3 = inlined_call_operand.vmem [shape: f32[8,2], index: 3, kind: output, shape index: {}]  }
   0x1   :  { %v160_v0 = vld [vmem:[%s273_s1] sm:$0xff]  ;;  %v165_v1 = vld [vmem:[%s273_s1 + $0x8] sm:$0xff]  ;;  %v45_v2 = vld [vmem:[%s274_s2 + $0x78] sm:$0xff]  ;;  %v23_v36 = vstv %s275_s0  ;;  %129 = vset.pattern.permute.xlu0 %v136_v45 }
   0x2   :  { %v18_v3 = vmax.f32 %v160_v0, %v165_v1  ;;  %62 = vmatpush.msra.mxu0 %v45_v2  ;;  %v61_v4 = vld [vmem:[%s274_s2 + $0xf8] sm:$0xff]  ;;  %v44_v5 = vld [vmem:[%s274_s2 + $0x70] sm:$0xff]  ;;  %v43_v7 = vld [vmem:[%s274_s2 + $0x68] sm:$0xff] }
   0x3   :  { %v60_v6 = vld [vmem:[%s274_s2 + $0xf0] sm:$0xff]  ;;  %82 = vmatpush.msra.mxu1 %v61_v4  ;;  %v59_v8 = vld [vmem:[%s274_s2 + $0xe8] sm:$0xff]  ;;  %v42_v9 = vld [vmem:[%s274_s2 + $0x60] sm:$0xff] }
   0x4   :  { %19 = vmax.xlane.f32.xlu0 %v18_v3  ;;  %63 = vmatpush.msra.mxu0 %v44_v5  ;;  %v58_v10 = vld [vmem:[%s274_s2 + $0xe0] sm:$0xff]  ;;  %v41_v11 = vld [vmem:[%s274_s2 + $0x58] sm:$0xff]  ;;  %v40_v13 = vld [vmem:[%s274_s2 + $0x50] sm:$0xff] }
   0x5   :  { %83 = vmatpush.msra.mxu1 %v60_v6  ;;  %v57_v12 = vld [vmem:[%s274_s2 + $0xd8] sm:$0xff]  ;;  %v56_v14 = vld [vmem:[%s274_s2 + $0xd0] sm:$0xff]  ;;  %v39_v15 = vld [vmem:[%s274_s2 + $0x48] sm:$0xff] }
   0x6   :  { %64 = vmatpush.msra.mxu0 %v43_v7  ;;  %v55_v16 = vld [vmem:[%s274_s2 + $0xc8] sm:$0xff]  ;;  %v38_v17 = vld [vmem:[%s274_s2 + $0x40] sm:$0xff]  ;;  %v37_v19 = vld [vmem:[%s274_s2 + $0x38] sm:$0xff] }
   0x7   :  { %84 = vmatpush.msra.mxu1 %v59_v8  ;;  %v54_v18 = vld [vmem:[%s274_s2 + $0xc0] sm:$0xff]  ;;  %v53_v20 = vld [vmem:[%s274_s2 + $0xb8] sm:$0xff]  ;;  %v36_v21 = vld [vmem:[%s274_s2 + $0x30] sm:$0xff] }
   0x8   :  { %65 = vmatpush.msra.mxu0 %v42_v9  ;;  %v52_v22 = vld [vmem:[%s274_s2 + $0xb0] sm:$0xff]  ;;  %v35_v23 = vld [vmem:[%s274_s2 + $0x28] sm:$0xff]  ;;  %v34_v25 = vld [vmem:[%s274_s2 + $0x20] sm:$0xff] }
   0x9   :  { %85 = vmatpush.msra.mxu1 %v58_v10  ;;  %v51_v24 = vld [vmem:[%s274_s2 + $0xa8] sm:$0xff]  ;;  %v50_v26 = vld [vmem:[%s274_s2 + $0xa0] sm:$0xff]  ;;  %v33_v27 = vld [vmem:[%s274_s2 + $0x18] sm:$0xff] }
   0xa   :  { %66 = vmatpush.msra.mxu0 %v41_v11  ;;  %v49_v28 = vld [vmem:[%s274_s2 + $0x98] sm:$0xff]  ;;  %v32_v29 = vld [vmem:[%s274_s2 + $0x10] sm:$0xff]  ;;  %v31_v31 = vld [vmem:[%s274_s2 + $0x8] sm:$0xff] }
   0xb   :  { %86 = vmatpush.msra.mxu1 %v57_v12  ;;  %v48_v30 = vld [vmem:[%s274_s2 + $0x90] sm:$0xff]  ;;  %v47_v32 = vld [vmem:[%s274_s2 + $0x88] sm:$0xff]  ;;  %v30_v33 = vld [vmem:[%s274_s2] sm:$0xff] }
   0xc   :  { %67 = vmatpush.msra.mxu0 %v40_v13  ;;  %v46_v34 = vld [vmem:[%s274_s2 + $0x80] sm:$0xff] }
   0xd   :  { %87 = vmatpush.msra.mxu1 %v56_v14 }
   0xe   :  { %68 = vmatpush.msra.mxu0 %v39_v15 }
   0xf   :  { %88 = vmatpush.msra.mxu1 %v55_v16 }
  0x10   :  { %69 = vmatpush.msra.mxu0 %v38_v17 }
  0x11   :  { %89 = vmatpush.msra.mxu1 %v54_v18 }
  0x12   :  { %70 = vmatpush.msra.mxu0 %v37_v19 }
  0x13   :  { %90 = vmatpush.msra.mxu1 %v53_v20 }
  0x14   :  { %71 = vmatpush.msra.mxu0 %v36_v21 }
  0x15   :  { %91 = vmatpush.msra.mxu1 %v52_v22 }
  0x16   :  { %72 = vmatpush.msra.mxu0 %v35_v23 }
  0x17   :  { %92 = vmatpush.msra.mxu1 %v51_v24 }
  0x18   :  { %73 = vmatpush.msra.mxu0 %v34_v25 }
  0x19   :  { %93 = vmatpush.msra.mxu1 %v50_v26 }
  0x1a   :  { %74 = vmatpush.msra.mxu0 %v33_v27 }
  0x1b   :  { %94 = vmatpush.msra.mxu1 %v49_v28 }
  0x1c   :  { %75 = vmatpush.msra.mxu0 %v32_v29 }
  0x1d   :  { %95 = vmatpush.msra.mxu1 %v48_v30 }
  0x1e   :  { %76 = vmatpush.msra.mxu0 %v31_v31 }
  0x1f   :  { %96 = vmatpush.msra.mxu1 %v47_v32 }
  0x20   :  { %77 = vmatpush.msra.mxu0 %v30_v33 }
  0x21   :  { %97 = vmatpush.msra.mxu1 %v46_v34 }
  0x77   :  { %v20_v35 = vpop.xlane.xlu0 %19 }
  0x78   :  { %v21_v37 = vsub.f32 %v160_v0, %v20_v35  ;;  %v22_v38 = vsub.f32 %v165_v1, %v20_v35 }
  0x7a   :  { %v24_v39 = vmul.f32 %v23_v36, %v21_v37  ;;  %v25_v40 = vmul.f32 %v23_v36, %v22_v38 }
  0x7c   :  { %v26_v41 = vmul.f32 1.442695, %v24_v39  ;;  %v28_v42 = vmul.f32 1.442695, %v25_v40 }
  0x7e   :  { %130 = vpow2.f32 %v26_v41 }
  0x7f   :  { %132 = vpow2.f32 %v28_v42 }
  0x84   :  { %v131_v43 = vpop.eup %130 }
  0x85   :  { %v133_v44 = vpop.eup %132  ;;  %78 = vmatmul.f32.vlgmr.msra.gmra.mxu0 %v131_v43 }
  0x86   :  { %98 = vmatmul.f32.vlgmr.msra.gmra.mxu1 %v133_v44 }
 0x102   :  { %v79_v46 = vpop.f32.mrf.mxu0 }
 0x103   :  { %v99_v47 = vpop.f32.mrf.mxu1 }
 0x104   :  { %v100_v48 = vadd.f32 %v99_v47, %v79_v46 }
 0x106   :  { %134 = vrcp.f32 %v100_v48  ;;  %v113_v52 = vand.u32 2147483648, %v100_v48  ;;  %v111_v54 = vand.u32 2147483647, %v100_v48  ;;  %vm107_vm1 = vweird.f32 %v100_v48 }
 0x108   :  { %v114_v56 = vor.u32 1.1754944e-38, %v113_v52  ;;  %vm112_vm3 = vcmp.eq.f32.partialorder %v111_v54, 8.507059e+37 }
 0x10c   :  { %v135_v49 = vpop.eup %134 }
 0x10d   :  { %v103_v50 = vmul.f32 %v135_v49, %v100_v48  ;;  %vm108_vm0 = vweird.f32 %v135_v49 }
 0x10e   :  { %vm109_vm2 = vmor %vm107_vm1, %vm108_vm0 }
 0x10f   :  { %v104_v51 = vsub.f32 1.0, %v103_v50 }
 0x111   :  { %v105_v53 = vmul.f32 %v135_v49, %v104_v51 }
 0x113   :  { %v106_v55 = vadd.f32 %v135_v49, %v105_v53 }
 0x115   :  { %v110_v57 = vsel %vm109_vm2, %v135_v49, %v106_v55 }
 0x116   :  { %v115_v58 = vsel %vm112_vm3, %v114_v56, %v110_v57 }
 0x117   :  { %118 = vperm.xlu0 %129, %v115_v58  }
 0x189   :  { %v119_v59 = vpop.permute.xlu0 %118 }
 0x18a   :  { %v121_v60 = vmul.f32 %v119_v59, %v100_v48 }
 0x18c   :  { %123 = vst.msk [vmem:[%s276_s3] sm:$0xff] %vm122_vm4, %v121_v60 }

</bundles_post_ra>
